<compile_context>
chip_gen: v7x
topology: tpu7x:2x2x1
jax: 0.10.0
libtpu: 0.0.40
codegen_flags: <defaults>
</compile_context>

<pallas_src>
import jax
import jax.numpy as jnp
from jax.experimental import pallas as pl
from jax.experimental.pallas import tpu as pltpu

HIDDEN = 32
IN_FEAT = 4
IN_FEAT_PAD = 8          # pad features 4 -> 8 so the first-layer weight is sublane aligned

_F_RES_LAYERS = 6        # 3 Res_Block_Event x 2 linears
_G_RES_LAYERS = 6        # 3 Res_Block_Set   x 2 linears
_F_W_ROWS = IN_FEAT_PAD + (_F_RES_LAYERS + 1) * HIDDEN      # 232
_G_W_ROWS = (_G_RES_LAYERS + 1) * HIDDEN + 8                # 232 (last 8 rows: padded g_w2^T)


# ----------------------------------------------------------------------------- kernels
def _f_kernel(x_ref, w_ref, b_ref, pooled_ref):
    """Per-set-element MLP `f` + mean over the set dimension for one tile.

    x_ref:      (TM, IN_FEAT_PAD)   TM = sets_per_tile * N rows
    w_ref:      (232, HIDDEN)       packed f weights (resident)
    b_ref:      (8, HIDDEN)         packed f biases, row i = bias of layer i
    pooled_ref: (sets_per_tile, HIDDEN)
    """
    tm = x_ref.shape[0]
    ts = pooled_ref.shape[0]
    n = tm // ts                                            # set size (static)

    h = jnp.dot(x_ref[...], w_ref[0:IN_FEAT_PAD, :],
                preferred_element_type=jnp.float32) + b_ref[0]
    h = jnp.maximum(h, 0.0)
    for i in range(_F_RES_LAYERS):
        lo = IN_FEAT_PAD + HIDDEN * i
        h = jnp.dot(h, w_ref[lo:lo + HIDDEN, :],
                    preferred_element_type=jnp.float32) + b_ref[1 + i]
        h = jnp.maximum(h, 0.0)
    lo = IN_FEAT_PAD + HIDDEN * _F_RES_LAYERS
    h = jnp.dot(h, w_ref[lo:lo + HIDDEN, :],
                preferred_element_type=jnp.float32) + b_ref[1 + _F_RES_LAYERS]

    # mean over the set dim: (TM,H) -> (TS,N,H) -> sum over N (sublane reduce)
    pooled_ref[...] = h.reshape(ts, n, HIDDEN).sum(axis=1) * (1.0 / n)


def _g_kernel(pooled_ref, w_ref, b_ref, out_ref):
    """Per-set MLP `g`, transposed: activations are (HIDDEN, B), B on lanes.

    pooled_ref: (B, HIDDEN)
    w_ref:      (232, HIDDEN)  rows [32*i : 32*i+32] = layer-i weight, pre-transposed
    b_ref:      (HIDDEN, 8)    column i = bias of layer i; [0,7] = final scalar bias
    out_ref:    (1, B)         lane-dense output
    """
    s = pooled_ref[...].T                                   # (H, B)
    for i in range(_G_RES_LAYERS + 1):                      # 6 res linears + g_w1, all ReLU'd
        w_t = w_ref[HIDDEN * i:HIDDEN * (i + 1), :]         # (H, H)
        s = jnp.dot(w_t, s, preferred_element_type=jnp.float32) + b_ref[:, i:i + 1]
        s = jnp.maximum(s, 0.0)
    lo = HIDDEN * (_G_RES_LAYERS + 1)
    w_last_t = w_ref[lo:lo + 1, :]                          # (1, H) = g_w2^T
    out_ref[...] = (jnp.dot(w_last_t, s, preferred_element_type=jnp.float32)
                    + b_ref[0:1, 7:8])


# ----------------------------------------------------------------------------- wrappers
def _pack_params(params):
    """Concatenate the 12 parameter arrays into 4 flat f32 slabs."""
    (f_w1, f_b1, f_res_w, f_res_b, f_wlast, f_blast,
     g_res_w, g_res_b, g_w1, g_b1, g_w2, g_b2) = params

    # ---- f slabs (natural orientation: rows = in-features) ----
    f_w1_pad = jnp.zeros((IN_FEAT_PAD, HIDDEN), jnp.float32).at[:IN_FEAT].set(f_w1)
    f_w_slab = jnp.concatenate(
        [f_w1_pad, f_res_w.reshape(_F_RES_LAYERS * HIDDEN, HIDDEN), f_wlast], axis=0)
    f_b_slab = jnp.concatenate([f_b1, f_res_b, f_blast], axis=0)            # (8, 32)

    # ---- g slabs (pre-transposed: layer computes W^T @ s^T + b) ----
    g_w_t = jnp.concatenate(
        [jnp.swapaxes(g_res_w, 1, 2).reshape(_G_RES_LAYERS * HIDDEN, HIDDEN),
         g_w1.T], axis=0)                                                   # (224, 32)
    g_w2_t_pad = jnp.zeros((8, HIDDEN), jnp.float32).at[0:1].set(g_w2.T)
    g_w_slab = jnp.concatenate([g_w_t, g_w2_t_pad], axis=0)                 # (232, 32)

    b2_row = jnp.zeros((1, HIDDEN), jnp.float32).at[0, 0].set(g_b2[0, 0])
    g_b_slab = jnp.concatenate([g_res_b, g_b1, b2_row], axis=0).T           # (32, 8)

    return f_w_slab, f_b_slab, g_w_slab, g_b_slab


def _pick_sets_per_tile(num_sets, set_size):
    """~2048 rows of f-work per grid step; tile must divide B and be 8-aligned."""
    target = max(1, 2048 // max(set_size, 1))
    if num_sets <= target:
        return num_sets                       # single / full-extent blocks (always legal)
    for s in range(min(target, num_sets), 7, -1):
        if num_sets % s == 0 and s % 8 == 0:
            return s
    return num_sets                           # fallback: one big tile


def _forward(x, params):
    B, N, F = x.shape
    f_w_slab, f_b_slab, g_w_slab, g_b_slab = _pack_params(params)

    x2d = x.reshape(B * N, F).astype(jnp.float32)
    x2d = jnp.pad(x2d, ((0, 0), (0, IN_FEAT_PAD - F)))      # zero-pad features 4 -> 8

    sets_per_tile = _pick_sets_per_tile(B, N)
    tm = sets_per_tile * N
    grid = (B // sets_per_tile,)

    # ----- f network + per-set mean: gridded, pipelined over tiles of rows -----
    pooled = pl.pallas_call(
        _f_kernel,
        out_shape=jax.ShapeDtypeStruct((B, HIDDEN), jnp.float32),
        grid=grid,
        in_specs=[
            pl.BlockSpec((tm, IN_FEAT_PAD), lambda i: (i, 0)),
            pl.BlockSpec(f_w_slab.shape, lambda i: (0, 0)),   # weights stay resident
            pl.BlockSpec(f_b_slab.shape, lambda i: (0, 0)),
        ],
        out_specs=pl.BlockSpec((sets_per_tile, HIDDEN), lambda i: (i, 0)),
        compiler_params=pltpu.CompilerParams(
            dimension_semantics=("parallel",)),
    )(x2d, f_w_slab, f_b_slab)

    # ----- g network: tiny second call, transposed so everything is lane-dense -----
    out = pl.pallas_call(
        _g_kernel,
        out_shape=jax.ShapeDtypeStruct((1, B), jnp.float32),
        in_specs=[pl.BlockSpec(memory_space=pltpu.MemorySpace.VMEM)] * 3,
        out_specs=pl.BlockSpec(memory_space=pltpu.MemorySpace.VMEM),
    )(pooled, g_w_slab, g_b_slab)

    return jnp.squeeze(out)   # matches torch.squeeze


deep_sets_forward = jax.jit(_forward)


# ----------------------------------------------------------------------------- init & reference
def init_params(key):
    """Deterministic PyTorch-Linear-style init: U(-1/sqrt(fan_in), 1/sqrt(fan_in))."""
    keys = iter(jax.random.split(key, 32))

    def lin(fan_in, fan_out):
        bound = 1.0 / (fan_in ** 0.5)
        w = jax.random.uniform(next(keys), (fan_in, fan_out), jnp.float32, -bound, bound)
        b = jax.random.uniform(next(keys), (1, fan_out), jnp.float32, -bound, bound)
        return w, b

    f_w1, f_b1 = lin(IN_FEAT, HIDDEN)
    f_res_ws, f_res_bs = [], []
    for _ in range(_F_RES_LAYERS):
        w, b = lin(HIDDEN, HIDDEN)
        f_res_ws.append(w)
        f_res_bs.append(b)
    f_res_w = jnp.stack(f_res_ws)            # (6, 32, 32)
    f_res_b = jnp.concatenate(f_res_bs, 0)   # (6, 32)
    f_wlast, f_blast = lin(HIDDEN, HIDDEN)

    g_res_ws, g_res_bs = [], []
    for _ in range(_G_RES_LAYERS):
        w, b = lin(HIDDEN, HIDDEN)
        g_res_ws.append(w)
        g_res_bs.append(b)
    g_res_w = jnp.stack(g_res_ws)
    g_res_b = jnp.concatenate(g_res_bs, 0)
    g_w1, g_b1 = lin(HIDDEN, HIDDEN)
    g_w2, g_b2 = lin(HIDDEN, 1)

    return (f_w1, f_b1, f_res_w, f_res_b, f_wlast, f_blast,
            g_res_w, g_res_b, g_w1, g_b1, g_w2, g_b2)


def deep_sets_ref(x, params):
    """Pure-JAX reference mirroring the PyTorch forward."""
    (f_w1, f_b1, f_res_w, f_res_b, f_wlast, f_blast,
     g_res_w, g_res_b, g_w1, g_b1, g_w2, g_b2) = params
    h = jax.nn.relu(x @ f_w1 + f_b1)
    for i in range(3):
        h = jax.nn.relu(h @ f_res_w[2 * i] + f_res_b[2 * i])
        h = jax.nn.relu(h @ f_res_w[2 * i + 1] + f_res_b[2 * i + 1])
    h = h @ f_wlast + f_blast
    s = jnp.mean(h, axis=1)
    for i in range(3):
        s = jax.nn.relu(s @ g_res_w[2 * i] + g_res_b[2 * i])
        s = jax.nn.relu(s @ g_res_w[2 * i + 1] + g_res_b[2 * i + 1])
    s = jax.nn.relu(s @ g_w1 + g_b1)
    s = s @ g_w2 + g_b2
    return jnp.squeeze(s)


if __name__ == "__main__":
    key = jax.random.PRNGKey(0)
    k_x, k_p = jax.random.split(key)

    B, N = 2, 8  # batch of 2 sets, 8 elements each, 4 features per element
    x = jax.random.normal(k_x, (B, N, IN_FEAT), dtype=jnp.float32)
    params = init_params(k_p)

    out = deep_sets_forward(x, params)
    out = jax.block_until_ready(out)

    ref = deep_sets_ref(x, params)
    assert out.shape == (B,), out.shape
    assert jnp.allclose(out, ref, atol=1e-5, rtol=1e-5), (out, ref)

    print("KERNEL_OK")
</pallas_src>

<mosaic_0001>
module attributes {stable_mosaic.version = 11 : i64} {
  func.func @_f_kernel(%arg0: i32, %arg1: memref<16x8xf32, #tpu.memory_space<vmem>>, %arg2: memref<232x32xf32, #tpu.memory_space<vmem>>, %arg3: memref<8x32xf32, #tpu.memory_space<vmem>>, %arg4: memref<2x32xf32, #tpu.memory_space<vmem>>) attributes {dimension_semantics = [#tpu.dimension_semantics<parallel>], iteration_bounds = array<i64: 1>, scalar_prefetch = 0 : i64, scratch_operands = 0 : i64, tpu.core_type = #tpu.core_type<tc>, window_params = [{transform_indices = @transform_0, window_bounds = array<i64: 16, 8>}, {pipeline_mode = #tpu.pipeline_mode<synchronous>, transform_indices = @transform_1, window_bounds = array<i64: 232, 32>}, {pipeline_mode = #tpu.pipeline_mode<synchronous>, transform_indices = @transform_2, window_bounds = array<i64: 8, 32>}, {transform_indices = @transform_3, window_bounds = array<i64: 2, 32>}]} {
    %c0 = arith.constant 0 : index
    %c0_0 = arith.constant 0 : index
    %0 = vector.load %arg1[%c0, %c0_0] : memref<16x8xf32, #tpu.memory_space<vmem>>, vector<16x8xf32>
    %c0_1 = arith.constant 0 : index
    %c0_2 = arith.constant 0 : index
    %1 = vector.load %arg2[%c0_1, %c0_2] : memref<232x32xf32, #tpu.memory_space<vmem>>, vector<8x32xf32>
    %cst = arith.constant dense<0.000000e+00> : vector<16x32xf32>
    %2 = tpu.matmul %0, %1, %cst {dimension_numbers = #tpu.dot_dimension_numbers<[1], [0], [0], [1], [0, 0, 1, 1], [], []>} : vector<16x8xf32>, vector<8x32xf32>, vector<16x32xf32> -> vector<16x32xf32>
    %c0_3 = arith.constant 0 : index
    %c0_4 = arith.constant 0 : index
    %3 = vector.load %arg3[%c0_3, %c0_4] : memref<8x32xf32, #tpu.memory_space<vmem>>, vector<1x32xf32>
    %4 = vector.shape_cast %3 : vector<1x32xf32> to vector<32xf32>
    %5 = vector.shape_cast %4 : vector<32xf32> to vector<1x32xf32>
    %6 = vector.broadcast %5 : vector<1x32xf32> to vector<16x32xf32>
    %7 = arith.addf %2, %6 : vector<16x32xf32>
    %cst_5 = arith.constant 0.000000e+00 : f32
    %8 = vector.broadcast %cst_5 : f32 to vector<16x32xf32>
    %9 = arith.maximumf %7, %8 : vector<16x32xf32>
    %c8 = arith.constant 8 : index
    %c0_6 = arith.constant 0 : index
    %10 = vector.load %arg2[%c8, %c0_6] : memref<232x32xf32, #tpu.memory_space<vmem>>, vector<32x32xf32>
    %cst_7 = arith.constant dense<0.000000e+00> : vector<16x32xf32>
    %11 = tpu.matmul %9, %10, %cst_7 {dimension_numbers = #tpu.dot_dimension_numbers<[1], [0], [0], [1], [0, 0, 1, 1], [], []>} : vector<16x32xf32>, vector<32x32xf32>, vector<16x32xf32> -> vector<16x32xf32>
    %c1 = arith.constant 1 : index
    %c0_8 = arith.constant 0 : index
    %12 = vector.load %arg3[%c1, %c0_8] : memref<8x32xf32, #tpu.memory_space<vmem>>, vector<1x32xf32>
    %13 = vector.shape_cast %12 : vector<1x32xf32> to vector<32xf32>
    %14 = vector.shape_cast %13 : vector<32xf32> to vector<1x32xf32>
    %15 = vector.broadcast %14 : vector<1x32xf32> to vector<16x32xf32>
    %16 = arith.addf %11, %15 : vector<16x32xf32>
    %cst_9 = arith.constant 0.000000e+00 : f32
    %17 = vector.broadcast %cst_9 : f32 to vector<16x32xf32>
    %18 = arith.maximumf %16, %17 : vector<16x32xf32>
    %c40 = arith.constant 40 : index
    %c0_10 = arith.constant 0 : index
    %19 = vector.load %arg2[%c40, %c0_10] : memref<232x32xf32, #tpu.memory_space<vmem>>, vector<32x32xf32>
    %cst_11 = arith.constant dense<0.000000e+00> : vector<16x32xf32>
    %20 = tpu.matmul %18, %19, %cst_11 {dimension_numbers = #tpu.dot_dimension_numbers<[1], [0], [0], [1], [0, 0, 1, 1], [], []>} : vector<16x32xf32>, vector<32x32xf32>, vector<16x32xf32> -> vector<16x32xf32>
    %c2 = arith.constant 2 : index
    %c0_12 = arith.constant 0 : index
    %21 = vector.load %arg3[%c2, %c0_12] : memref<8x32xf32, #tpu.memory_space<vmem>>, vector<1x32xf32>
    %22 = vector.shape_cast %21 : vector<1x32xf32> to vector<32xf32>
    %23 = vector.shape_cast %22 : vector<32xf32> to vector<1x32xf32>
    %24 = vector.broadcast %23 : vector<1x32xf32> to vector<16x32xf32>
    %25 = arith.addf %20, %24 : vector<16x32xf32>
    %cst_13 = arith.constant 0.000000e+00 : f32
    %26 = vector.broadcast %cst_13 : f32 to vector<16x32xf32>
    %27 = arith.maximumf %25, %26 : vector<16x32xf32>
    %c72 = arith.constant 72 : index
    %c0_14 = arith.constant 0 : index
    %28 = vector.load %arg2[%c72, %c0_14] : memref<232x32xf32, #tpu.memory_space<vmem>>, vector<32x32xf32>
    %cst_15 = arith.constant dense<0.000000e+00> : vector<16x32xf32>
    %29 = tpu.matmul %27, %28, %cst_15 {dimension_numbers = #tpu.dot_dimension_numbers<[1], [0], [0], [1], [0, 0, 1, 1], [], []>} : vector<16x32xf32>, vector<32x32xf32>, vector<16x32xf32> -> vector<16x32xf32>
    %c3 = arith.constant 3 : index
    %c0_16 = arith.constant 0 : index
    %30 = vector.load %arg3[%c3, %c0_16] : memref<8x32xf32, #tpu.memory_space<vmem>>, vector<1x32xf32>
    %31 = vector.shape_cast %30 : vector<1x32xf32> to vector<32xf32>
    %32 = vector.shape_cast %31 : vector<32xf32> to vector<1x32xf32>
    %33 = vector.broadcast %32 : vector<1x32xf32> to vector<16x32xf32>
    %34 = arith.addf %29, %33 : vector<16x32xf32>
    %cst_17 = arith.constant 0.000000e+00 : f32
    %35 = vector.broadcast %cst_17 : f32 to vector<16x32xf32>
    %36 = arith.maximumf %34, %35 : vector<16x32xf32>
    %c104 = arith.constant 104 : index
    %c0_18 = arith.constant 0 : index
    %37 = vector.load %arg2[%c104, %c0_18] : memref<232x32xf32, #tpu.memory_space<vmem>>, vector<32x32xf32>
    %cst_19 = arith.constant dense<0.000000e+00> : vector<16x32xf32>
    %38 = tpu.matmul %36, %37, %cst_19 {dimension_numbers = #tpu.dot_dimension_numbers<[1], [0], [0], [1], [0, 0, 1, 1], [], []>} : vector<16x32xf32>, vector<32x32xf32>, vector<16x32xf32> -> vector<16x32xf32>
    %c4 = arith.constant 4 : index
    %c0_20 = arith.constant 0 : index
    %39 = vector.load %arg3[%c4, %c0_20] : memref<8x32xf32, #tpu.memory_space<vmem>>, vector<1x32xf32>
    %40 = vector.shape_cast %39 : vector<1x32xf32> to vector<32xf32>
    %41 = vector.shape_cast %40 : vector<32xf32> to vector<1x32xf32>
    %42 = vector.broadcast %41 : vector<1x32xf32> to vector<16x32xf32>
    %43 = arith.addf %38, %42 : vector<16x32xf32>
    %cst_21 = arith.constant 0.000000e+00 : f32
    %44 = vector.broadcast %cst_21 : f32 to vector<16x32xf32>
    %45 = arith.maximumf %43, %44 : vector<16x32xf32>
    %c136 = arith.constant 136 : index
    %c0_22 = arith.constant 0 : index
    %46 = vector.load %arg2[%c136, %c0_22] : memref<232x32xf32, #tpu.memory_space<vmem>>, vector<32x32xf32>
    %cst_23 = arith.constant dense<0.000000e+00> : vector<16x32xf32>
    %47 = tpu.matmul %45, %46, %cst_23 {dimension_numbers = #tpu.dot_dimension_numbers<[1], [0], [0], [1], [0, 0, 1, 1], [], []>} : vector<16x32xf32>, vector<32x32xf32>, vector<16x32xf32> -> vector<16x32xf32>
    %c5 = arith.constant 5 : index
    %c0_24 = arith.constant 0 : index
    %48 = vector.load %arg3[%c5, %c0_24] : memref<8x32xf32, #tpu.memory_space<vmem>>, vector<1x32xf32>
    %49 = vector.shape_cast %48 : vector<1x32xf32> to vector<32xf32>
    %50 = vector.shape_cast %49 : vector<32xf32> to vector<1x32xf32>
    %51 = vector.broadcast %50 : vector<1x32xf32> to vector<16x32xf32>
    %52 = arith.addf %47, %51 : vector<16x32xf32>
    %cst_25 = arith.constant 0.000000e+00 : f32
    %53 = vector.broadcast %cst_25 : f32 to vector<16x32xf32>
    %54 = arith.maximumf %52, %53 : vector<16x32xf32>
    %c168 = arith.constant 168 : index
    %c0_26 = arith.constant 0 : index
    %55 = vector.load %arg2[%c168, %c0_26] : memref<232x32xf32, #tpu.memory_space<vmem>>, vector<32x32xf32>
    %cst_27 = arith.constant dense<0.000000e+00> : vector<16x32xf32>
    %56 = tpu.matmul %54, %55, %cst_27 {dimension_numbers = #tpu.dot_dimension_numbers<[1], [0], [0], [1], [0, 0, 1, 1], [], []>} : vector<16x32xf32>, vector<32x32xf32>, vector<16x32xf32> -> vector<16x32xf32>
    %c6 = arith.constant 6 : index
    %c0_28 = arith.constant 0 : index
    %57 = vector.load %arg3[%c6, %c0_28] : memref<8x32xf32, #tpu.memory_space<vmem>>, vector<1x32xf32>
    %58 = vector.shape_cast %57 : vector<1x32xf32> to vector<32xf32>
    %59 = vector.shape_cast %58 : vector<32xf32> to vector<1x32xf32>
    %60 = vector.broadcast %59 : vector<1x32xf32> to vector<16x32xf32>
    %61 = arith.addf %56, %60 : vector<16x32xf32>
    %cst_29 = arith.constant 0.000000e+00 : f32
    %62 = vector.broadcast %cst_29 : f32 to vector<16x32xf32>
    %63 = arith.maximumf %61, %62 : vector<16x32xf32>
    %c200 = arith.constant 200 : index
    %c0_30 = arith.constant 0 : index
    %64 = vector.load %arg2[%c200, %c0_30] : memref<232x32xf32, #tpu.memory_space<vmem>>, vector<32x32xf32>
    %cst_31 = arith.constant dense<0.000000e+00> : vector<16x32xf32>
    %65 = tpu.matmul %63, %64, %cst_31 {dimension_numbers = #tpu.dot_dimension_numbers<[1], [0], [0], [1], [0, 0, 1, 1], [], []>} : vector<16x32xf32>, vector<32x32xf32>, vector<16x32xf32> -> vector<16x32xf32>
    %c7 = arith.constant 7 : index
    %c0_32 = arith.constant 0 : index
    %66 = vector.load %arg3[%c7, %c0_32] : memref<8x32xf32, #tpu.memory_space<vmem>>, vector<1x32xf32>
    %67 = vector.shape_cast %66 : vector<1x32xf32> to vector<32xf32>
    %68 = vector.shape_cast %67 : vector<32xf32> to vector<1x32xf32>
    %69 = vector.broadcast %68 : vector<1x32xf32> to vector<16x32xf32>
    %70 = arith.addf %65, %69 : vector<16x32xf32>
    %71 = vector.shape_cast %70 : vector<16x32xf32> to vector<2x8x32xf32>
    %cst_33 = arith.constant dense<0.000000e+00> : vector<2x32xf32>
    %72 = vector.multi_reduction <add>, %71, %cst_33 [1] : vector<2x8x32xf32> to vector<2x32xf32>
    %cst_34 = arith.constant 1.250000e-01 : f32
    %73 = vector.broadcast %cst_34 : f32 to vector<2x32xf32>
    %74 = arith.mulf %72, %73 : vector<2x32xf32>
    %c0_35 = arith.constant 0 : index
    %c0_36 = arith.constant 0 : index
    %75 = vector.load %arg4[%c0_35, %c0_36] : memref<2x32xf32, #tpu.memory_space<vmem>>, vector<2x32xf32>
    tpu.vector_store %arg4[%c0_35, %c0_36], %74 {strides = array<i32>} : memref<2x32xf32, #tpu.memory_space<vmem>>, vector<2x32xf32>,
    return
  }
  func.func @transform_0(%arg0: i32) -> (i32, i32) {
    %c0_i32 = arith.constant 0 : i32
    %c0_i32_0 = arith.constant 0 : i32
    return %arg0, %c0_i32 : i32, i32
  }
  func.func @transform_1(%arg0: i32) -> (i32, i32) {
    %c0_i32 = arith.constant 0 : i32
    %c0_i32_0 = arith.constant 0 : i32
    %c0_i32_1 = arith.constant 0 : i32
    return %c0_i32, %c0_i32_0 : i32, i32
  }
  func.func @transform_2(%arg0: i32) -> (i32, i32) {
    %c0_i32 = arith.constant 0 : i32
    %c0_i32_0 = arith.constant 0 : i32
    %c0_i32_1 = arith.constant 0 : i32
    return %c0_i32, %c0_i32_0 : i32, i32
  }
  func.func @transform_3(%arg0: i32) -> (i32, i32) {
    %c0_i32 = arith.constant 0 : i32
    %c0_i32_0 = arith.constant 0 : i32
    return %arg0, %c0_i32 : i32, i32
  }
}

module attributes {stable_mosaic.version = 11 : i64} {
  func.func @_g_kernel(%arg0: memref<2x32xf32, #tpu.memory_space<vmem>>, %arg1: memref<232x32xf32, #tpu.memory_space<vmem>>, %arg2: memref<32x8xf32, #tpu.memory_space<vmem>>, %arg3: memref<1x2xf32, #tpu.memory_space<vmem>>) attributes {dimension_semantics = [], scalar_prefetch = 0 : i64, scratch_operands = 0 : i64, tpu.core_type = #tpu.core_type<tc>} {
    %c0 = arith.constant 0 : index
    %c0_0 = arith.constant 0 : index
    %0 = vector.load %arg0[%c0, %c0_0] : memref<2x32xf32, #tpu.memory_space<vmem>>, vector<2x32xf32>
    %1 = tpu.transpose %0, [1, 0] : vector<2x32xf32> -> vector<32x2xf32>
    %c0_1 = arith.constant 0 : index
    %c0_2 = arith.constant 0 : index
    %2 = vector.load %arg1[%c0_1, %c0_2] : memref<232x32xf32, #tpu.memory_space<vmem>>, vector<32x32xf32>
    %cst = arith.constant dense<0.000000e+00> : vector<32x2xf32>
    %3 = tpu.matmul %2, %1, %cst {dimension_numbers = #tpu.dot_dimension_numbers<[1], [0], [0], [1], [0, 0, 1, 1], [], []>} : vector<32x32xf32>, vector<32x2xf32>, vector<32x2xf32> -> vector<32x2xf32>
    %c0_3 = arith.constant 0 : index
    %c0_4 = arith.constant 0 : index
    %4 = vector.load %arg2[%c0_3, %c0_4] : memref<32x8xf32, #tpu.memory_space<vmem>>, vector<32x1xf32>
    %5 = vector.broadcast %4 : vector<32x1xf32> to vector<32x2xf32>
    %6 = arith.addf %3, %5 : vector<32x2xf32>
    %cst_5 = arith.constant 0.000000e+00 : f32
    %7 = vector.broadcast %cst_5 : f32 to vector<32x2xf32>
    %8 = arith.maximumf %6, %7 : vector<32x2xf32>
    %c32 = arith.constant 32 : index
    %c0_6 = arith.constant 0 : index
    %9 = vector.load %arg1[%c32, %c0_6] : memref<232x32xf32, #tpu.memory_space<vmem>>, vector<32x32xf32>
    %cst_7 = arith.constant dense<0.000000e+00> : vector<32x2xf32>
    %10 = tpu.matmul %9, %8, %cst_7 {dimension_numbers = #tpu.dot_dimension_numbers<[1], [0], [0], [1], [0, 0, 1, 1], [], []>} : vector<32x32xf32>, vector<32x2xf32>, vector<32x2xf32> -> vector<32x2xf32>
    %c0_8 = arith.constant 0 : index
    %c1 = arith.constant 1 : index
    %11 = vector.load %arg2[%c0_8, %c1] : memref<32x8xf32, #tpu.memory_space<vmem>>, vector<32x1xf32>
    %12 = vector.broadcast %11 : vector<32x1xf32> to vector<32x2xf32>
    %13 = arith.addf %10, %12 : vector<32x2xf32>
    %cst_9 = arith.constant 0.000000e+00 : f32
    %14 = vector.broadcast %cst_9 : f32 to vector<32x2xf32>
    %15 = arith.maximumf %13, %14 : vector<32x2xf32>
    %c64 = arith.constant 64 : index
    %c0_10 = arith.constant 0 : index
    %16 = vector.load %arg1[%c64, %c0_10] : memref<232x32xf32, #tpu.memory_space<vmem>>, vector<32x32xf32>
    %cst_11 = arith.constant dense<0.000000e+00> : vector<32x2xf32>
    %17 = tpu.matmul %16, %15, %cst_11 {dimension_numbers = #tpu.dot_dimension_numbers<[1], [0], [0], [1], [0, 0, 1, 1], [], []>} : vector<32x32xf32>, vector<32x2xf32>, vector<32x2xf32> -> vector<32x2xf32>
    %c0_12 = arith.constant 0 : index
    %c2 = arith.constant 2 : index
    %18 = vector.load %arg2[%c0_12, %c2] : memref<32x8xf32, #tpu.memory_space<vmem>>, vector<32x1xf32>
    %19 = vector.broadcast %18 : vector<32x1xf32> to vector<32x2xf32>
    %20 = arith.addf %17, %19 : vector<32x2xf32>
    %cst_13 = arith.constant 0.000000e+00 : f32
    %21 = vector.broadcast %cst_13 : f32 to vector<32x2xf32>
    %22 = arith.maximumf %20, %21 : vector<32x2xf32>
    %c96 = arith.constant 96 : index
    %c0_14 = arith.constant 0 : index
    %23 = vector.load %arg1[%c96, %c0_14] : memref<232x32xf32, #tpu.memory_space<vmem>>, vector<32x32xf32>
    %cst_15 = arith.constant dense<0.000000e+00> : vector<32x2xf32>
    %24 = tpu.matmul %23, %22, %cst_15 {dimension_numbers = #tpu.dot_dimension_numbers<[1], [0], [0], [1], [0, 0, 1, 1], [], []>} : vector<32x32xf32>, vector<32x2xf32>, vector<32x2xf32> -> vector<32x2xf32>
    %c0_16 = arith.constant 0 : index
    %c3 = arith.constant 3 : index
    %25 = vector.load %arg2[%c0_16, %c3] : memref<32x8xf32, #tpu.memory_space<vmem>>, vector<32x1xf32>
    %26 = vector.broadcast %25 : vector<32x1xf32> to vector<32x2xf32>
    %27 = arith.addf %24, %26 : vector<32x2xf32>
    %cst_17 = arith.constant 0.000000e+00 : f32
    %28 = vector.broadcast %cst_17 : f32 to vector<32x2xf32>
    %29 = arith.maximumf %27, %28 : vector<32x2xf32>
    %c128 = arith.constant 128 : index
    %c0_18 = arith.constant 0 : index
    %30 = vector.load %arg1[%c128, %c0_18] : memref<232x32xf32, #tpu.memory_space<vmem>>, vector<32x32xf32>
    %cst_19 = arith.constant dense<0.000000e+00> : vector<32x2xf32>
    %31 = tpu.matmul %30, %29, %cst_19 {dimension_numbers = #tpu.dot_dimension_numbers<[1], [0], [0], [1], [0, 0, 1, 1], [], []>} : vector<32x32xf32>, vector<32x2xf32>, vector<32x2xf32> -> vector<32x2xf32>
    %c0_20 = arith.constant 0 : index
    %c4 = arith.constant 4 : index
    %32 = vector.load %arg2[%c0_20, %c4] : memref<32x8xf32, #tpu.memory_space<vmem>>, vector<32x1xf32>
    %33 = vector.broadcast %32 : vector<32x1xf32> to vector<32x2xf32>
    %34 = arith.addf %31, %33 : vector<32x2xf32>
    %cst_21 = arith.constant 0.000000e+00 : f32
    %35 = vector.broadcast %cst_21 : f32 to vector<32x2xf32>
    %36 = arith.maximumf %34, %35 : vector<32x2xf32>
    %c160 = arith.constant 160 : index
    %c0_22 = arith.constant 0 : index
    %37 = vector.load %arg1[%c160, %c0_22] : memref<232x32xf32, #tpu.memory_space<vmem>>, vector<32x32xf32>
    %cst_23 = arith.constant dense<0.000000e+00> : vector<32x2xf32>
    %38 = tpu.matmul %37, %36, %cst_23 {dimension_numbers = #tpu.dot_dimension_numbers<[1], [0], [0], [1], [0, 0, 1, 1], [], []>} : vector<32x32xf32>, vector<32x2xf32>, vector<32x2xf32> -> vector<32x2xf32>
    %c0_24 = arith.constant 0 : index
    %c5 = arith.constant 5 : index
    %39 = vector.load %arg2[%c0_24, %c5] : memref<32x8xf32, #tpu.memory_space<vmem>>, vector<32x1xf32>
    %40 = vector.broadcast %39 : vector<32x1xf32> to vector<32x2xf32>
    %41 = arith.addf %38, %40 : vector<32x2xf32>
    %cst_25 = arith.constant 0.000000e+00 : f32
    %42 = vector.broadcast %cst_25 : f32 to vector<32x2xf32>
    %43 = arith.maximumf %41, %42 : vector<32x2xf32>
    %c192 = arith.constant 192 : index
    %c0_26 = arith.constant 0 : index
    %44 = vector.load %arg1[%c192, %c0_26] : memref<232x32xf32, #tpu.memory_space<vmem>>, vector<32x32xf32>
    %cst_27 = arith.constant dense<0.000000e+00> : vector<32x2xf32>
    %45 = tpu.matmul %44, %43, %cst_27 {dimension_numbers = #tpu.dot_dimension_numbers<[1], [0], [0], [1], [0, 0, 1, 1], [], []>} : vector<32x32xf32>, vector<32x2xf32>, vector<32x2xf32> -> vector<32x2xf32>
    %c0_28 = arith.constant 0 : index
    %c6 = arith.constant 6 : index
    %46 = vector.load %arg2[%c0_28, %c6] : memref<32x8xf32, #tpu.memory_space<vmem>>, vector<32x1xf32>
    %47 = vector.broadcast %46 : vector<32x1xf32> to vector<32x2xf32>
    %48 = arith.addf %45, %47 : vector<32x2xf32>
    %cst_29 = arith.constant 0.000000e+00 : f32
    %49 = vector.broadcast %cst_29 : f32 to vector<32x2xf32>
    %50 = arith.maximumf %48, %49 : vector<32x2xf32>
    %c224 = arith.constant 224 : index
    %c0_30 = arith.constant 0 : index
    %51 = vector.load %arg1[%c224, %c0_30] : memref<232x32xf32, #tpu.memory_space<vmem>>, vector<1x32xf32>
    %cst_31 = arith.constant dense<0.000000e+00> : vector<1x2xf32>
    %52 = tpu.matmul %51, %50, %cst_31 {dimension_numbers = #tpu.dot_dimension_numbers<[1], [0], [0], [1], [0, 0, 1, 1], [], []>} : vector<1x32xf32>, vector<32x2xf32>, vector<1x2xf32> -> vector<1x2xf32>
    %c0_32 = arith.constant 0 : index
    %c7 = arith.constant 7 : index
    %53 = vector.load %arg2[%c0_32, %c7] : memref<32x8xf32, #tpu.memory_space<vmem>>, vector<1x1xf32>
    %54 = vector.broadcast %53 : vector<1x1xf32> to vector<1x2xf32>
    %55 = arith.addf %52, %54 : vector<1x2xf32>
    %c0_33 = arith.constant 0 : index
    %c0_34 = arith.constant 0 : index
    %56 = vector.load %arg3[%c0_33, %c0_34] : memref<1x2xf32, #tpu.memory_space<vmem>>, vector<1x2xf32>
    tpu.vector_store %arg3[%c0_33, %c0_34], %55 {strides = array<i32>} : memref<1x2xf32, #tpu.memory_space<vmem>>, vector<1x2xf32>,
    return
  }
}

</mosaic_0001>

<bundles_post_ra>
// kernel: _forward.2
= control target key start
LH: loop header
LB: loop body
LE: loop exit
PB: predicated region body
PF: predicated region fallthrough
CT: control target
= control target key end

     0   :  { %vm22_vm0 = vcmask 64512   ;;  %vm115_vm1 = vcmask 261120   ;;  %vm767_vm2 = vcmask 1041409   ;;  %vm770_vm3 = vcmask 254976   ;;  %s1139_s1 = inlined_call_operand.vmem [shape: f32[232,32], index: 1, kind: input, shape index: {}]   ;;  %s1140_s0 = inlined_call_operand.vmem [shape: f32[16,8], index: 0, kind: input, shape index: {}]   ;;  %s1141_s2 = inlined_call_operand.vmem [shape: f32[8,32], index: 2, kind: input, shape index: {}]   ;;  %s1142_s3 = inlined_call_operand.vmem [shape: f32[2,32], index: 3, kind: output, shape index: {}]  }
   0x1   :  { %v16_v0 = vld [vmem:[%s1139_s1] sm:$0xff]  ;;  %v15_v2 = vld [vmem:[%s1140_s0 + $0x8] sm:$0xff]  ;;  %v107_v4 = vld [vmem:[%s1139_s1 + $0x10] sm:$0xff] }
   0x2   :  { %v14_v1 = vld [vmem:[%s1140_s0] sm:$0xff]  ;;  %845 = vmatprep.subr.mxu0 %v16_v0  ;;  %v106_v3 = vld [vmem:[%s1139_s1 + $0x8] sm:$0xff]  ;;  %v108_v6 = vld [vmem:[%s1139_s1 + $0x18] sm:$0xff] }
   0x3   :  { %847 = vmatprep.mubr.msk.f32.mxu0 %vm22_vm0, %v14_v1  ;;  %846 = vmatpush3.msra.mxu0 %v16_v0  ;;  %v927_v5 = vpack.c.bf16 %v107_v4, %v106_v3  ;;  %v109_v7 = vld [vmem:[%s1139_s1 + $0x20] sm:$0xff]  ;;  %v199_v9 = vld [vmem:[%s1139_s1 + $0x28] sm:$0xff]  ;;  %v200_v10 = vld [vmem:[%s1139_s1 + $0x30] sm:$0xff] }
   0x4   :  { %848 = vmatmul.mubr.msk.f32.vlgmr.msra.gmra.mrb[0].mxu0 %vm22_vm0, %v15_v2  ;;  %v931_v8 = vpack.c.bf16 %v109_v7, %v108_v6  ;;  %v935_v11 = vpack.c.bf16 %v200_v10, %v199_v9  ;;  %v776_v12 = vld [vmem:[%s1141_s2] ss:$0 sm:$0xff]  ;;  %v201_v19 = vld [vmem:[%s1139_s1 + $0x38] sm:$0xff]  ;;  %v291_v22 = vld [vmem:[%s1139_s1 + $0x48] sm:$0xff] }
   0x5   :  { %928 = vmatprep.subr.bf16.mxu1 %v927_v5  ;;  %v202_v20 = vld [vmem:[%s1139_s1 + $0x40] sm:$0xff]  ;;  %v292_v23 = vld [vmem:[%s1139_s1 + $0x50] sm:$0xff]  ;;  %v293_v32 = vld [vmem:[%s1139_s1 + $0x58] sm:$0xff] }
   0x6   :  { %930 = vmatpush3.bf16.msra.mxu1 %v927_v5  ;;  %936 = vmatprep.subr.bf16.mxu0 %v935_v11  ;;  %v939_v21 = vpack.c.bf16 %v202_v20, %v201_v19  ;;  %v943_v24 = vpack.c.bf16 %v292_v23, %v291_v22  ;;  %v779_v25 = vld [vmem:[%s1141_s2 + $0x1] ss:$0 sm:$0xff]  ;;  %v383_v35 = vld [vmem:[%s1139_s1 + $0x68] sm:$0xff]  ;;  %v384_v36 = vld [vmem:[%s1139_s1 + $0x70] sm:$0xff] }
   0x7   :  { %932 = vmatprep.subr.bf16.mxu1 %v931_v8  ;;  %938 = vmatpush3.bf16.msra.mxu0 %v935_v11  ;;  %v294_v33 = vld [vmem:[%s1139_s1 + $0x60] sm:$0xff]  ;;  %v951_v37 = vpack.c.bf16 %v384_v36, %v383_v35  ;;  %v385_v45 = vld [vmem:[%s1139_s1 + $0x78] sm:$0xff]  ;;  %v475_v48 = vld [vmem:[%s1139_s1 + $0x88] sm:$0xff] }
   0x8   :  { %940 = vmatprep.subr.bf16.mxu0 %v939_v21  ;;  %v947_v34 = vpack.c.bf16 %v294_v33, %v293_v32  ;;  %v782_v38 = vld [vmem:[%s1141_s2 + $0x2] ss:$0 sm:$0xff]  ;;  %v476_v49 = vld [vmem:[%s1139_s1 + $0x90] sm:$0xff]  ;;  %v785_v51 = vld [vmem:[%s1141_s2 + $0x3] ss:$0 sm:$0xff] }
   0x9   :  { %v386_v46 = vld [vmem:[%s1139_s1 + $0x80] sm:$0xff]  ;;  %v959_v50 = vpack.c.bf16 %v476_v49, %v475_v48  ;;  %v477_v58 = vld [vmem:[%s1139_s1 + $0x98] sm:$0xff]  ;;  %v567_v61 = vld [vmem:[%s1139_s1 + $0xa8] sm:$0xff] }
   0xa   :  { %934 = vmatpush3.bf16.msra.mxu1 %v931_v8  ;;  %v955_v47 = vpack.c.bf16 %v386_v46, %v385_v45  ;;  %v478_v59 = vld [vmem:[%s1139_s1 + $0xa0] sm:$0xff]  ;;  %v568_v62 = vld [vmem:[%s1139_s1 + $0xb0] sm:$0xff]  ;;  %v569_v7 = vld [vmem:[%s1139_s1 + $0xb8] sm:$0xff] }
   0xb   :  { %942 = vmatpush3.bf16.msra.mxu0 %v939_v21  ;;  %944 = vmatprep.subr.bf16.mxu1 %v943_v24  ;;  %v963_v60 = vpack.c.bf16 %v478_v59, %v477_v58  ;;  %v967_v63 = vpack.c.bf16 %v568_v62, %v567_v61  ;;  %v788_v0 = vld [vmem:[%s1141_s2 + $0x4] ss:$0 sm:$0xff]  ;;  %v659_v10 = vld [vmem:[%s1139_s1 + $0xc8] sm:$0xff]  ;;  %v660_v11 = vld [vmem:[%s1139_s1 + $0xd0] sm:$0xff] }
   0xc   :  { %952 = vmatprep.subr.bf16.mxu0 %v951_v37  ;;  %v570_v8 = vld [vmem:[%s1139_s1 + $0xc0] sm:$0xff]  ;;  %v661_v20 = vld [vmem:[%s1139_s1 + $0xd8] sm:$0xff] }
   0xd   :  { %v971_v9 = vpack.c.bf16 %v570_v8, %v569_v7  ;;  %v662_v21 = vld [vmem:[%s1139_s1 + $0xe0] sm:$0xff] }
   0xe   :  { %v979_v22 = vpack.c.bf16 %v662_v21, %v661_v20  ;;  %v794_v23 = vld [vmem:[%s1141_s2 + $0x6] ss:$0 sm:$0xff] }
  0xd7   :  { %v849_v13 = vpop.f32.mrb[0].mxu0 }
  0xd8   :  { %v101_v14 = vadd.f32 %v849_v13, %v776_v12  ;;  %v95_v15 = vpop.f32.mrb[1].mxu0  ;;  %v791_v13 = vld [vmem:[%s1141_s2 + $0x5] ss:$0 sm:$0xff] }
  0xd9   :  { %v96_v16 = vadd.f32 %v776_v12, %v95_v15  ;;  %v975_v12 = vpack.c.bf16 %v660_v11, %v659_v10 }
  0xda   :  { %v105_v18 = vmax.f32 %v101_v14, 0.0 }
  0xdb   :  { %v104_v17 = vmax.f32 %v96_v16, 0.0 }
  0xdd   :  { %858 = vmatprep.mubr.msk.f32.mxu1 %vm115_vm1, %v104_v17 }
  0xde   :  { %859 = vmatmul.mubr.msk.f32.vlgmr.msra.gmra.mrb[0].mxu1 %vm115_vm1, %v105_v18 }
  0xdf   :  { %946 = vmatpush3.bf16.msra.mxu1 %v943_v24 }
  0xe0   :  { %948 = vmatprep.subr.bf16.mxu1 %v947_v34 }
  0xe3   :  { %950 = vmatpush3.bf16.msra.mxu1 %v947_v34 }
  0xe4   :  { %960 = vmatprep.subr.bf16.mxu1 %v959_v50 }
 0x1b1   :  { %v860_v26 = vpop.f32.mrb[0].mxu1 }
 0x1b2   :  { %v194_v27 = vadd.f32 %v860_v26, %v779_v25  ;;  %v188_v28 = vpop.f32.mrb[1].mxu1 }
 0x1b3   :  { %v189_v29 = vadd.f32 %v779_v25, %v188_v28 }
 0x1b4   :  { %v198_v31 = vmax.f32 %v194_v27, 0.0 }
 0x1b5   :  { %v197_v30 = vmax.f32 %v189_v29, 0.0 }
 0x1b7   :  { %869 = vmatprep.mubr.msk.f32.mxu0 %vm115_vm1, %v197_v30  ;;  %v797_v30 = vld [vmem:[%s1141_s2 + $0x7] ss:$0 sm:$0xff] }
 0x1b8   :  { %870 = vmatmul.mubr.msk.f32.vlgmr.msra.gmra.mrb[2].mxu0 %vm115_vm1, %v198_v31 }
 0x1b9   :  { %954 = vmatpush3.bf16.msra.mxu0 %v951_v37 }
 0x1ba   :  { %956 = vmatprep.subr.bf16.mxu0 %v955_v47 }
 0x1bd   :  { %958 = vmatpush3.bf16.msra.mxu0 %v955_v47 }
 0x1be   :  { %968 = vmatprep.subr.bf16.mxu0 %v967_v63 }
 0x28b   :  { %v871_v39 = vpop.f32.mrb[2].mxu0 }
 0x28c   :  { %v286_v40 = vadd.f32 %v871_v39, %v782_v38  ;;  %v280_v41 = vpop.f32.mrb[3].mxu0 }
 0x28d   :  { %v281_v42 = vadd.f32 %v782_v38, %v280_v41 }
 0x28e   :  { %v290_v44 = vmax.f32 %v286_v40, 0.0 }
 0x28f   :  { %v289_v43 = vmax.f32 %v281_v42, 0.0 }
 0x291   :  { %880 = vmatprep.mubr.msk.f32.mxu1 %vm115_vm1, %v289_v43 }
 0x292   :  { %881 = vmatmul.mubr.msk.f32.vlgmr.msra.gmra.mrb[2].mxu1 %vm115_vm1, %v290_v44 }
 0x293   :  { %962 = vmatpush3.bf16.msra.mxu1 %v959_v50 }
 0x294   :  { %964 = vmatprep.subr.bf16.mxu1 %v963_v60 }
 0x297   :  { %966 = vmatpush3.bf16.msra.mxu1 %v963_v60 }
 0x298   :  { %976 = vmatprep.subr.bf16.mxu1 %v975_v12 }
 0x365   :  { %v882_v52 = vpop.f32.mrb[2].mxu1 }
 0x366   :  { %v378_v53 = vadd.f32 %v882_v52, %v785_v51  ;;  %v372_v54 = vpop.f32.mrb[3].mxu1 }
 0x367   :  { %v373_v55 = vadd.f32 %v785_v51, %v372_v54 }
 0x368   :  { %v382_v57 = vmax.f32 %v378_v53, 0.0 }
 0x369   :  { %v381_v56 = vmax.f32 %v373_v55, 0.0 }
 0x36b   :  { %891 = vmatprep.mubr.msk.f32.mxu0 %vm115_vm1, %v381_v56 }
 0x36c   :  { %892 = vmatmul.mubr.msk.f32.vlgmr.msra.gmra.mrb[4].mxu0 %vm115_vm1, %v382_v57 }
 0x36d   :  { %970 = vmatpush3.bf16.msra.mxu0 %v967_v63 }
 0x36e   :  { %972 = vmatprep.subr.bf16.mxu0 %v971_v9 }
 0x371   :  { %974 = vmatpush3.bf16.msra.mxu0 %v971_v9 }
 0x43f   :  { %v893_v1 = vpop.f32.mrb[4].mxu0 }
 0x440   :  { %v470_v2 = vadd.f32 %v893_v1, %v788_v0  ;;  %v464_v3 = vpop.f32.mrb[5].mxu0 }
 0x441   :  { %v465_v4 = vadd.f32 %v788_v0, %v464_v3 }
 0x442   :  { %v474_v6 = vmax.f32 %v470_v2, 0.0 }
 0x443   :  { %v473_v5 = vmax.f32 %v465_v4, 0.0 }
 0x445   :  { %902 = vmatprep.mubr.msk.f32.mxu1 %vm115_vm1, %v473_v5 }
 0x446   :  { %903 = vmatmul.mubr.msk.f32.vlgmr.msra.gmra.mrb[4].mxu1 %vm115_vm1, %v474_v6 }
 0x447   :  { %978 = vmatpush3.bf16.msra.mxu1 %v975_v12 }
 0x448   :  { %980 = vmatprep.subr.bf16.mxu1 %v979_v22 }
 0x44b   :  { %982 = vmatpush3.bf16.msra.mxu1 %v979_v22 }
 0x519   :  { %v904_v14 = vpop.f32.mrb[4].mxu1 }
 0x51a   :  { %v562_v15 = vadd.f32 %v904_v14, %v791_v13  ;;  %v556_v16 = vpop.f32.mrb[5].mxu1 }
 0x51b   :  { %v557_v17 = vadd.f32 %v791_v13, %v556_v16 }
 0x51c   :  { %v566_v19 = vmax.f32 %v562_v15, 0.0 }
 0x51d   :  { %v565_v18 = vmax.f32 %v557_v17, 0.0 }
 0x51f   :  { %913 = vmatprep.mubr.msk.f32.mxu0 %vm115_vm1, %v565_v18 }
 0x520   :  { %914 = vmatmul.mubr.msk.f32.vlgmr.msra.gmra.mrb[6].mxu0 %vm115_vm1, %v566_v19 }
 0x5f3   :  { %v915_v24 = vpop.f32.mrb[6].mxu0 }
 0x5f4   :  { %v654_v25 = vadd.f32 %v915_v24, %v794_v23  ;;  %v648_v26 = vpop.f32.mrb[7].mxu0 }
 0x5f5   :  { %v649_v27 = vadd.f32 %v794_v23, %v648_v26 }
 0x5f6   :  { %v658_v29 = vmax.f32 %v654_v25, 0.0 }
 0x5f7   :  { %v657_v28 = vmax.f32 %v649_v27, 0.0 }
 0x5f9   :  { %924 = vmatprep.mubr.msk.f32.mxu1 %vm115_vm1, %v657_v28 }
 0x5fa   :  { %925 = vmatmul.mubr.msk.f32.vlgmr.msra.gmra.mrb[6].mxu1 %vm115_vm1, %v658_v29 }
 0x6cd   :  { %v926_v31 = vpop.f32.mrb[6].mxu1 }
 0x6ce   :  { %v746_v32 = vadd.f32 %v926_v31, %v797_v30  ;;  %v740_v33 = vpop.f32.mrb[7].mxu1 }
 0x6cf   :  { %v741_v34 = vadd.f32 %v797_v30, %v740_v33 }
 0x6d0   :  { %v756_v35 = vsel %vm115_vm1, %v746_v32, 0.0 }
 0x6d1   :  { %v757_v36 = vrot.slane %v756_v35, 4  ;;  %v749_v37 = vsel %vm115_vm1, %v741_v34, 0.0 }
 0x6d2   :  { %v750_v38 = vrot.slane %v749_v37, 4 }
 0x6d3   :  { %v758_v39 = vadd.f32 %v757_v36, %v756_v35 }
 0x6d4   :  { %v751_v40 = vadd.f32 %v750_v38, %v749_v37 }
 0x6d5   :  { %v759_v41 = vrot.slane %v758_v39, 2 }
 0x6d6   :  { %v752_v42 = vrot.slane %v751_v40, 2 }
 0x6d7   :  { %v760_v43 = vadd.f32 %v759_v41, %v758_v39 }
 0x6d8   :  { %v753_v44 = vadd.f32 %v752_v42, %v751_v40 }
 0x6d9   :  { %v761_v45 = vrot.slane %v760_v43, 1 }
 0x6da   :  { %v754_v46 = vrot.slane %v753_v44, 1 }
 0x6db   :  { %v762_v47 = vadd.f32 %v761_v45, %v760_v43 }
 0x6dc   :  { %v755_v48 = vadd.f32 %v754_v46, %v753_v44 }
 0x6dd   :  { %v764_v49 = vmul.f32 0.125, %v762_v47 }
 0x6de   :  { %v763_v50 = vmul.f32 0.125, %v755_v48 }
 0x6e0   :  { %v768_v51 = vsel %vm767_vm2, %v764_v49, %v763_v50 }
 0x6e1   :  { %771 = vst.msk [vmem:[%s1142_s3] sm:$0x3] %vm770_vm3, %v768_v51 }

// kernel: _forward.3
= control target key start
LH: loop header
LB: loop body
LE: loop exit
PB: predicated region body
PF: predicated region fallthrough
CT: control target
= control target key end

     0   :  { %vm44_vm0 = vcmask 261120   ;;  %v1267_v4 = vmov 0   ;;  %s1483_s0 = inlined_call_operand.vmem [shape: f32[2,32], index: 0, kind: input, shape index: {}]   ;;  %s1484_s1 = inlined_call_operand.vmem [shape: f32[232,32], index: 1, kind: input, shape index: {}]   ;;  %s1485_s2 = inlined_call_operand.vmem [shape: f32[32,8], index: 2, kind: input, shape index: {}]   ;;  %s1486_s3 = inlined_call_operand.hbm [shape: f32[1,2], index: 3, kind: output, shape index: {}]  }
   0x1   :  { %v15_v0 = vld [vmem:[%s1483_s0] sm:$0x3]  ;;  %v17_v3 = vld [vmem:[%s1484_s1 + $0x8] sm:$0xff]  ;;  %1228 = vset.pattern.permute.xlu0 %v1267_v4  ;;  %v1319_v5 = vld [vmem:[%s1485_s2 + $0x10] sm:$0xff]  ;;  %1229 = vset.pattern.permute.xlu1 %v1267_v4 }
   0x2   :  { %v16_v1 = vld [vmem:[%s1484_s1] sm:$0xff]  ;;  %1059 = vmatprep.subr.msk.mxu0 %vm44_vm0, %v15_v0  ;;  %v18_v6 = vld [vmem:[%s1484_s1 + $0x10] sm:$0xff] }
   0x3   :  { %1061 = vmatprep.mubr.msk.f32.mxu0 %vm44_vm0, %v16_v1  ;;  %v1310_v2 = vld [vmem:[%s1485_s2] sm:$0xff]  ;;  %1060 = vmatpush3.xpose.msk.msra.mxu0 %vm44_vm0, %v15_v0 }
   0x4   :  { %26 = vperm.xlu0 %1228, %v1310_v2  }
   0x5   :  { %8 = vsyncpa [#allocation3], 0  ;;  %36 = vperm.xlu1 %1229, %v1319_v5   ;;  %v1329_v7 = vld [vmem:[%s1485_s2 + $0x8] sm:$0xff]  ;;  %v1335_v8 = vld [vmem:[%s1485_s2 + $0x18] sm:$0xff]  ;;  %v1268_v11 = vmov 1   ;;  %v1269_v34 = vmov 2  }
   0x6   :  { %1062 = vmatmul.mubr.msk.f32.vlgmr.msra.gmra.mrb[0].mxu0 %vm44_vm0, %v17_v3  ;;  %v19_v9 = vld [vmem:[%s1484_s1 + $0x18] sm:$0xff]  ;;  %v149_v10 = vld [vmem:[%s1484_s1 + $0x20] sm:$0xff]  ;;  %v150_v30 = vld [vmem:[%s1484_s1 + $0x28] sm:$0xff]  ;;  %v1270_v57 = vmov 3   ;;  %vm1275_vm1 = vmmov 0   ;;  %s1278_s24 = smov [#allocation2]  }
   0x7   :  { %1064 = vmatprep.mubr.msk.f32.mxu0 %vm44_vm0, %v18_v6  ;;  %1075 = vmatprep.mubr.msk.f32.mxu1 %vm44_vm0, %v149_v10  ;;  %v151_v31 = vld [vmem:[%s1484_s1 + $0x30] sm:$0xff]  ;;  %v152_v32 = vld [vmem:[%s1484_s1 + $0x38] sm:$0xff]  ;;  %v270_v33 = vld [vmem:[%s1484_s1 + $0x40] sm:$0xff]  ;;  %s963_s25 = sshll.u32 %s1278_s24, 4  ;;  %vm955_vm2 = vcmask 8192   ;;  %s964_s25 = int_to_ptr.vmem [resolvable:$true] %s963_s25 }
   0x8   :  { %31 = vperm.xlu0 %1228, %v1329_v7   ;;  %v271_v53 = vld [vmem:[%s1484_s1 + $0x48] sm:$0xff]  ;;  %v272_v54 = vld [vmem:[%s1484_s1 + $0x50] sm:$0xff]  ;;  %v273_v55 = vld [vmem:[%s1484_s1 + $0x58] sm:$0xff]  ;;  %s1243_s26 = scalar_lea.vmem %s964_s25, 16  ;;  %s1247_s27 = scalar_lea.vmem %s964_s25, 32 }
   0x9   :  { %41 = vperm.xlu1 %1229, %v1335_v8   ;;  %v391_v56 = vld [vmem:[%s1484_s1 + $0x60] sm:$0xff]  ;;  %p1244_p0 = scmp.ne.s32.totalorder %s964_s25, %s1243_s26  ;;  %p1248_p1 = scmp.lt.s32.totalorder %s964_s25, %s964_s25 }
   0xa   :  { %1065 = vmatmul.mubr.msk.f32.gmra.mrb[2].mxu0 %vm44_vm0, %v19_v9  ;;  %p1249_p2 = scmp.lt.s32.totalorder %s1247_s27, %s1243_s26 }
   0xb   :  { %1089 = vmatprep.mubr.msk.f32.mxu0 %vm44_vm0, %v270_v33 }
   0xc   :  { %1230 = vset.pattern.permute.xlu0 %v1268_v11  ;;  %p1250_p3 = por %p1249_p2, %p1248_p1 }
   0xd   :  { %1231 = vset.pattern.permute.xlu1 %v1268_v11  ;;  %154 = vperm.xlu0 %1230, %v1310_v2  }
   0xe   :  { %158 = vperm.xlu1 %1231, %v1329_v7   ;;  %p1251_p4 = pnand %p1250_p3, %p1244_p0 }
  0x11   :  { %166 = vperm.xlu0 %1230, %v1335_v8  }
  0x12   :  { %162 = vperm.xlu1 %1231, %v1319_v5  }
  0x15   :  { %1233 = vset.pattern.permute.xlu0 %v1269_v34 }
  0x16   :  { %1232 = vset.pattern.permute.xlu1 %v1269_v34  ;;  %279 = vperm.xlu0 %1233, %v1329_v7  }
  0x17   :  { %275 = vperm.xlu1 %1232, %v1310_v2  }
  0x1a   :  { %1234 = vset.pattern.permute.xlu0 %v1270_v57 }
  0x1b   :  { %283 = vperm.xlu1 %1232, %v1319_v5   ;;  %396 = vperm.xlu0 %1234, %v1310_v2  }
  0x1f   :  { %287 = vperm.xlu1 %1232, %v1335_v8   ;;  %408 = vperm.xlu0 %1234, %v1335_v8  }
  0x23   :  { %1235 = vset.pattern.permute.xlu1 %v1270_v57 }
  0x24   :  { %400 = vperm.xlu1 %1235, %v1329_v7  }
  0x28   :  { %404 = vperm.xlu1 %1235, %v1319_v5  }
  0x83   :  { %v27_v12 = vpop.permute.xlu0 %26 }
  0x84   :  { %v37_v13 = vpop.permute.xlu1 %36 }
  0x87   :  { %v32_v14 = vpop.permute.xlu0 %31 }
  0x88   :  { %v42_v20 = vpop.permute.xlu1 %41 }
  0x8c   :  { %v155_v35 = vpop.permute.xlu0 %154 }
  0x8d   :  { %v159_v36 = vpop.permute.xlu1 %158 }
  0x90   :  { %v167_v42 = vpop.permute.xlu0 %166 }
  0x91   :  { %v163_v45 = vpop.permute.xlu1 %162 }
  0x95   :  { %v280_v60 = vpop.permute.xlu0 %279 }
  0x96   :  { %v276_v58 = vpop.permute.xlu1 %275 }
  0x9a   :  { %v284_v59 = vpop.permute.xlu1 %283 }
  0x9e   :  { %v288_v3 = vpop.permute.xlu1 %287 }
  0xd9   :  { %v1063_v15 = vpop.f32.mrb[0].mxu0 }
  0xda   :  { %v132_v16 = vadd.f32 %v1063_v15, %v32_v14  ;;  %v126_v17 = vpop.f32.mrb[1].mxu0 }
  0xdb   :  { %v127_v18 = vadd.f32 %v126_v17, %v27_v12  ;;  %v393_v17 = vld [vmem:[%s1484_s1 + $0x70] sm:$0xff] }
  0xdc   :  { %v146_v19 = vmax.f32 %v132_v16, 0.0  ;;  %v392_v16 = vld [vmem:[%s1484_s1 + $0x68] sm:$0xff] }
  0xdd   :  { %v145_v21 = vmax.f32 %v127_v18, 0.0  ;;  %v1066_v22 = vpop.f32.mrb[2].mxu0  ;;  %v394_v18 = vld [vmem:[%s1484_s1 + $0x78] sm:$0xff] }
  0xde   :  { %v142_v23 = vadd.f32 %v1066_v22, %v42_v20  ;;  %v136_v24 = vpop.f32.mrb[3].mxu0  ;;  %v1271_v20 = vmov 4   ;;  %v401_v22 = vpop.permute.xlu1 %400 }
  0xdf   :  { %v137_v25 = vadd.f32 %v136_v24, %v37_v13  ;;  %v1162_v26 = vpack.c.bf16 %v146_v19, %v145_v21  ;;  %v512_v19 = vld [vmem:[%s1484_s1 + $0x80] sm:$0xff]  ;;  %1236 = vset.pattern.permute.xlu1 %v1271_v20  ;;  %1237 = vset.pattern.permute.xlu0 %v1271_v20  ;;  %v397_v21 = vpop.permute.xlu0 %396 }
  0xe0   :  { %v148_v27 = vmax.f32 %v142_v23, 0.0  ;;  %517 = vperm.xlu1 %1236, %v1310_v2   ;;  %521 = vperm.xlu0 %1237, %v1329_v7  }
  0xe1   :  { %v147_v28 = vmax.f32 %v137_v25, 0.0  ;;  %1163 = vmatprep.subr.bf16.mxu1 %v1162_v26 }
  0xe2   :  { %1165 = vmatpush3.bf16.msra.mxu1 %v1162_v26 }
  0xe3   :  { %v1166_v29 = vpack.c.bf16 %v148_v27, %v147_v28  ;;  %v409_v28 = vpop.permute.xlu0 %408 }
  0xe4   :  { %525 = vperm.xlu1 %1236, %v1319_v5  }
  0xe5   :  { %1167 = vmatprep.subr.bf16.mxu1 %v1166_v29 }
  0xe6   :  { %1169 = vmatpush3.bf16.msra.mxu1 %v1166_v29 }
  0xe8   :  { %529 = vperm.xlu1 %1236, %v1335_v8  }
  0xe9   :  { %1076 = vmatmul.mubr.msk.f32.vlgmr.msra.gmra.mrb[0].mxu1 %vm44_vm0, %v150_v30 }
  0xea   :  { %1078 = vmatprep.mubr.msk.f32.mxu1 %vm44_vm0, %v151_v31  ;;  %v405_v31 = vpop.permute.xlu1 %404 }
  0xed   :  { %1079 = vmatmul.mubr.msk.f32.gmra.mrb[2].mxu1 %vm44_vm0, %v152_v32 }
  0xee   :  { %1103 = vmatprep.mubr.msk.f32.mxu1 %vm44_vm0, %v391_v56 }
 0x1bc   :  { %v1077_v37 = vpop.f32.mrb[0].mxu1 }
 0x1bd   :  { %v253_v38 = vadd.f32 %v1077_v37, %v159_v36  ;;  %v247_v39 = vpop.f32.mrb[1].mxu1 }
 0x1be   :  { %v248_v40 = vadd.f32 %v247_v39, %v155_v35  ;;  %v513_v39 = vld [vmem:[%s1484_s1 + $0x88] sm:$0xff] }
 0x1bf   :  { %v267_v41 = vmax.f32 %v253_v38, 0.0 }
 0x1c0   :  { %v266_v43 = vmax.f32 %v248_v40, 0.0  ;;  %v1080_v44 = vpop.f32.mrb[2].mxu1  ;;  %v514_v40 = vld [vmem:[%s1484_s1 + $0x90] sm:$0xff] }
 0x1c1   :  { %v263_v46 = vadd.f32 %v1080_v44, %v167_v42  ;;  %v257_v47 = vpop.f32.mrb[3].mxu1  ;;  %v633_v42 = vld [vmem:[%s1484_s1 + $0xa0] sm:$0xff]  ;;  %v518_v44 = vpop.permute.xlu1 %517 }
 0x1c2   :  { %v1170_v48 = vpack.c.bf16 %v267_v41, %v266_v43  ;;  %v258_v49 = vadd.f32 %v257_v47, %v163_v45  ;;  %v515_v41 = vld [vmem:[%s1484_s1 + $0x98] sm:$0xff]  ;;  %v1272_v43 = vmov 5  }
 0x1c3   :  { %v269_v50 = vmax.f32 %v263_v46, 0.0  ;;  %1239 = vset.pattern.permute.xlu1 %v1272_v43  ;;  %1238 = vset.pattern.permute.xlu0 %v1272_v43  ;;  %v522_v46 = vpop.permute.xlu0 %521 }
 0x1c4   :  { %v268_v51 = vmax.f32 %v258_v49, 0.0  ;;  %1171 = vmatprep.subr.bf16.mxu0 %v1170_v48  ;;  %642 = vperm.xlu1 %1239, %v1329_v7  }
 0x1c5   :  { %1173 = vmatpush3.bf16.msra.mxu0 %v1170_v48  ;;  %638 = vperm.xlu0 %1238, %v1310_v2   ;;  %v526_v45 = vpop.permute.xlu1 %525 }
 0x1c6   :  { %v1174_v52 = vpack.c.bf16 %v269_v50, %v268_v51 }
 0x1c8   :  { %1175 = vmatprep.subr.bf16.mxu0 %v1174_v52  ;;  %646 = vperm.xlu1 %1239, %v1319_v5  }
 0x1c9   :  { %1177 = vmatpush3.bf16.msra.mxu0 %v1174_v52  ;;  %650 = vperm.xlu0 %1238, %v1335_v8   ;;  %v530_v52 = vpop.permute.xlu1 %529 }
 0x1cc   :  { %1090 = vmatmul.mubr.msk.f32.vlgmr.msra.gmra.mrb[4].mxu0 %vm44_vm0, %v271_v53 }
 0x1cd   :  { %1092 = vmatprep.mubr.msk.f32.mxu0 %vm44_vm0, %v272_v54 }
 0x1d0   :  { %1093 = vmatmul.mubr.msk.f32.gmra.mrb[6].mxu0 %vm44_vm0, %v273_v55 }
 0x1d1   :  { %1117 = vmatprep.mubr.msk.f32.mxu0 %vm44_vm0, %v512_v19 }
 0x29f   :  { %v1091_v61 = vpop.f32.mrb[4].mxu0 }
 0x2a0   :  { %v374_v62 = vadd.f32 %v1091_v61, %v280_v60  ;;  %v368_v63 = vpop.f32.mrb[5].mxu0 }
 0x2a1   :  { %v369_v0 = vadd.f32 %v368_v63, %v276_v58  ;;  %v635_v63 = vld [vmem:[%s1484_s1 + $0xb0] sm:$0xff] }
 0x2a2   :  { %v388_v1 = vmax.f32 %v374_v62, 0.0  ;;  %v634_v62 = vld [vmem:[%s1484_s1 + $0xa8] sm:$0xff] }
 0x2a3   :  { %v387_v4 = vmax.f32 %v369_v0, 0.0  ;;  %v1094_v6 = vpop.f32.mrb[6].mxu0  ;;  %v636_v0 = vld [vmem:[%s1484_s1 + $0xb8] sm:$0xff] }
 0x2a4   :  { %v384_v9 = vadd.f32 %v1094_v6, %v288_v3  ;;  %v378_v10 = vpop.f32.mrb[7].mxu0  ;;  %v1273_v3 = vmov 6   ;;  %v643_v6 = vpop.permute.xlu1 %642 }
 0x2a5   :  { %v1178_v11 = vpack.c.bf16 %v388_v1, %v387_v4  ;;  %v379_v12 = vadd.f32 %v378_v10, %v284_v59  ;;  %v754_v1 = vld [vmem:[%s1484_s1 + $0xc0] sm:$0xff]  ;;  %1240 = vset.pattern.permute.xlu1 %v1273_v3  ;;  %1241 = vset.pattern.permute.xlu0 %v1273_v3  ;;  %v639_v4 = vpop.permute.xlu0 %638 }
 0x2a6   :  { %v390_v13 = vmax.f32 %v384_v9, 0.0  ;;  %759 = vperm.xlu1 %1240, %v1310_v2   ;;  %763 = vperm.xlu0 %1241, %v1329_v7  }
 0x2a7   :  { %v389_v14 = vmax.f32 %v379_v12, 0.0  ;;  %1179 = vmatprep.subr.bf16.mxu1 %v1178_v11 }
 0x2a8   :  { %1181 = vmatpush3.bf16.msra.mxu1 %v1178_v11 }
 0x2a9   :  { %v1182_v15 = vpack.c.bf16 %v390_v13, %v389_v14  ;;  %v651_v14 = vpop.permute.xlu0 %650 }
 0x2aa   :  { %767 = vperm.xlu1 %1240, %v1319_v5  }
 0x2ab   :  { %1183 = vmatprep.subr.bf16.mxu1 %v1182_v15 }
 0x2ac   :  { %1185 = vmatpush3.bf16.msra.mxu1 %v1182_v15 }
 0x2ae   :  { %771 = vperm.xlu1 %1240, %v1335_v8   ;;  %v755_v8 = vld [vmem:[%s1484_s1 + $0xc8] sm:$0xff] }
 0x2af   :  { %1104 = vmatmul.mubr.msk.f32.vlgmr.msra.gmra.mrb[4].mxu1 %vm44_vm0, %v392_v16 }
 0x2b0   :  { %1106 = vmatprep.mubr.msk.f32.mxu1 %vm44_vm0, %v393_v17  ;;  %v647_v17 = vpop.permute.xlu1 %646 }
 0x2b3   :  { %1107 = vmatmul.mubr.msk.f32.gmra.mrb[6].mxu1 %vm44_vm0, %v394_v18 }
 0x2b4   :  { %1131 = vmatprep.mubr.msk.f32.mxu1 %vm44_vm0, %v633_v42 }
 0x382   :  { %v1105_v23 = vpop.f32.mrb[4].mxu1 }
 0x383   :  { %v495_v24 = vadd.f32 %v1105_v23, %v401_v22  ;;  %v489_v25 = vpop.f32.mrb[5].mxu1  ;;  %v756_v22 = vld [vmem:[%s1484_s1 + $0xd0] sm:$0xff]  ;;  %v757_v23 = vld [vmem:[%s1484_s1 + $0xd8] sm:$0xff] }
 0x384   :  { %v490_v26 = vadd.f32 %v489_v25, %v397_v21  ;;  %v1276_v25 = vmov 0.0  }
 0x385   :  { %v509_v27 = vmax.f32 %v495_v24, 0.0  ;;  %v1274_v24 = vmov 0.0|0.0  }
 0x386   :  { %v508_v29 = vmax.f32 %v490_v26, 0.0  ;;  %v1108_v30 = vpop.f32.mrb[6].mxu1  ;;  %v876_v26 = vld [vmem:[%s1485_s2] sm:$0x1] }
 0x387   :  { %v505_v32 = vadd.f32 %v1108_v30, %v409_v28  ;;  %v499_v33 = vpop.f32.mrb[7].mxu1  ;;  %v760_v28 = vpop.permute.xlu1 %759 }
 0x388   :  { %v1186_v34 = vpack.c.bf16 %v509_v27, %v508_v29  ;;  %v500_v35 = vadd.f32 %v499_v33, %v405_v31  ;;  %v1277_v27 = vmov 7   ;;  %v764_v30 = vpop.permute.xlu0 %763 }
 0x389   :  { %v511_v36 = vmax.f32 %v505_v32, 0.0  ;;  %1242 = vset.pattern.permute.xlu0 %v1277_v27 }
 0x38a   :  { %v510_v37 = vmax.f32 %v500_v35, 0.0  ;;  %1187 = vmatprep.subr.bf16.mxu0 %v1186_v34  ;;  %879 = vperm.xlu0 %1242, %v876_v26  }
 0x38b   :  { %1189 = vmatpush3.bf16.msra.mxu0 %v1186_v34  ;;  %v768_v29 = vpop.permute.xlu1 %767 }
 0x38c   :  { %v1190_v38 = vpack.c.bf16 %v511_v36, %v510_v37 }
 0x38e   :  { %1191 = vmatprep.subr.bf16.mxu0 %v1190_v38 }
 0x38f   :  { %1193 = vmatpush3.bf16.msra.mxu0 %v1190_v38  ;;  %v772_v36 = vpop.permute.xlu1 %771 }
 0x392   :  { %1118 = vmatmul.mubr.msk.f32.vlgmr.msra.gmra.mrb[8].mxu0 %vm44_vm0, %v513_v39 }
 0x393   :  { %1120 = vmatprep.mubr.msk.f32.mxu0 %vm44_vm0, %v514_v40 }
 0x396   :  { %1121 = vmatmul.mubr.msk.f32.gmra.mrb[10].mxu0 %vm44_vm0, %v515_v41 }
 0x397   :  { %1145 = vmatprep.mubr.msk.f32.mxu0 %vm44_vm0, %v754_v1 }
 0x465   :  { %v1119_v47 = vpop.f32.mrb[8].mxu0 }
 0x466   :  { %v616_v48 = vadd.f32 %v1119_v47, %v522_v46  ;;  %v610_v49 = vpop.f32.mrb[9].mxu0  ;;  %v875_v46 = vld [vmem:[%s1484_s1 + $0xe0] sm:$0x1]  ;;  %v880_v47 = vpop.permute.xlu0 %879 }
 0x467   :  { %v611_v50 = vadd.f32 %v610_v49, %v518_v44 }
 0x468   :  { %v630_v51 = vmax.f32 %v616_v48, 0.0 }
 0x469   :  { %v629_v53 = vmax.f32 %v611_v50, 0.0  ;;  %v1122_v54 = vpop.f32.mrb[10].mxu0 }
 0x46a   :  { %v626_v55 = vadd.f32 %v1122_v54, %v530_v52  ;;  %v620_v56 = vpop.f32.mrb[11].mxu0 }
 0x46b   :  { %v1194_v57 = vpack.c.bf16 %v630_v51, %v629_v53  ;;  %v621_v58 = vadd.f32 %v620_v56, %v526_v45 }
 0x46c   :  { %v632_v59 = vmax.f32 %v626_v55, 0.0 }
 0x46d   :  { %v631_v60 = vmax.f32 %v621_v58, 0.0  ;;  %1195 = vmatprep.subr.bf16.mxu1 %v1194_v57 }
 0x46e   :  { %1197 = vmatpush3.bf16.msra.mxu1 %v1194_v57 }
 0x46f   :  { %v1198_v61 = vpack.c.bf16 %v632_v59, %v631_v60 }
 0x471   :  { %1199 = vmatprep.subr.bf16.mxu1 %v1198_v61 }
 0x472   :  { %1201 = vmatpush3.bf16.msra.mxu1 %v1198_v61 }
 0x473   :  { %1210 = vmatprep.subr.bf16.mxu1 %v1274_v24 }
 0x475   :  { %1132 = vmatmul.mubr.msk.f32.vlgmr.msra.gmra.mrb[8].mxu1 %vm44_vm0, %v634_v62 }
 0x476   :  { %1134 = vmatprep.mubr.msk.f32.mxu1 %vm44_vm0, %v635_v63 }
 0x479   :  { %1135 = vmatmul.mubr.msk.f32.gmra.mrb[10].mxu1 %vm44_vm0, %v636_v0 }
 0x47a   :  { %1159 = vmatprep.mubr.msk.f32.mxu1 %vm1275_vm1, %v1276_v25 }
 0x548   :  { %v1133_v9 = vpop.f32.mrb[8].mxu1 }
 0x549   :  { %v737_v10 = vadd.f32 %v1133_v9, %v643_v6  ;;  %v731_v11 = vpop.f32.mrb[9].mxu1 }
 0x54a   :  { %v732_v12 = vadd.f32 %v731_v11, %v639_v4 }
 0x54b   :  { %v751_v13 = vmax.f32 %v737_v10, 0.0 }
 0x54c   :  { %v750_v15 = vmax.f32 %v732_v12, 0.0  ;;  %v1136_v16 = vpop.f32.mrb[10].mxu1 }
 0x54d   :  { %v747_v18 = vadd.f32 %v1136_v16, %v651_v14  ;;  %v741_v19 = vpop.f32.mrb[11].mxu1 }
 0x54e   :  { %v1202_v2 = vpack.c.bf16 %v751_v13, %v750_v15  ;;  %v742_v20 = vadd.f32 %v741_v19, %v647_v17 }
 0x54f   :  { %v753_v7 = vmax.f32 %v747_v18, 0.0 }
 0x550   :  { %v752_v21 = vmax.f32 %v742_v20, 0.0  ;;  %1203 = vmatprep.subr.bf16.mxu0 %v1202_v2 }
 0x551   :  { %1205 = vmatpush3.bf16.msra.mxu0 %v1202_v2 }
 0x552   :  { %v1206_v5 = vpack.c.bf16 %v753_v7, %v752_v21 }
 0x554   :  { %1207 = vmatprep.subr.bf16.mxu0 %v1206_v5 }
 0x555   :  { %1209 = vmatpush3.bf16.msra.mxu0 %v1206_v5 }
 0x558   :  { %1146 = vmatmul.mubr.msk.f32.vlgmr.msra.gmra.mrb[12].mxu0 %vm44_vm0, %v755_v8 }
 0x559   :  { %1148 = vmatprep.mubr.msk.f32.mxu0 %vm44_vm0, %v756_v22 }
 0x55c   :  { %1149 = vmatmul.mubr.msk.f32.gmra.mrb[14].mxu0 %vm44_vm0, %v757_v23 }
 0x62b   :  { %v1147_v31 = vpop.f32.mrb[12].mxu0 }
 0x62c   :  { %v858_v32 = vadd.f32 %v1147_v31, %v764_v30  ;;  %v852_v33 = vpop.f32.mrb[13].mxu0 }
 0x62d   :  { %v853_v34 = vadd.f32 %v852_v33, %v760_v28 }
 0x62e   :  { %v872_v35 = vmax.f32 %v858_v32, 0.0 }
 0x62f   :  { %v871_v37 = vmax.f32 %v853_v34, 0.0  ;;  %v1150_v38 = vpop.f32.mrb[14].mxu0 }
 0x630   :  { %v868_v39 = vadd.f32 %v1150_v38, %v772_v36  ;;  %v862_v40 = vpop.f32.mrb[15].mxu0 }
 0x631   :  { %v1211_v41 = vpack.c.bf16 %v872_v35, %v871_v37  ;;  %v863_v42 = vadd.f32 %v862_v40, %v768_v29 }
 0x632   :  { %v874_v43 = vmax.f32 %v868_v39, 0.0 }
 0x633   :  { %v873_v44 = vmax.f32 %v863_v42, 0.0  ;;  %1212 = vmatpush3.bf16.msra.mxu1 %v1211_v41 }
 0x634   :  { %1213 = vmatprep.subr.bf16.mxu1 %v1274_v24 }
 0x635   :  { %v1214_v45 = vpack.c.bf16 %v874_v43, %v873_v44 }
 0x637   :  { %1215 = vmatpush3.bf16.msra.mxu1 %v1214_v45 }
 0x63a   :  { %1160 = vmatmul.mubr.msk.f32.vlgmr.msra.gmra.mrb[12].mxu1 %vm44_vm0, %v875_v46 }
 0x70d   :  { %v951_v48 = vpop.f32.mrb[12].mxu1 }
 0x70e   :  { %v952_v49 = vadd.f32 %v951_v48, %v880_v47  ;;  %v1161_v50 = vpop.f32.mrb[13].mxu1 }
 0x710   :  { %956 = vst.msk [vmem:[#allocation2] sm:$0x1] %vm955_vm2, %v952_v49 }
 0x711   :  { %1254 = shalt.err (!%p1251_p4)
}
 0x712   :  { %s1255_s29 = scalar_lea.hbm %s1486_s3, 16 }
 0x713   :  { %p1256_p5 = scmp.ne.s32.totalorder %s1486_s3, %s1255_s29  ;;  %p1259_p6 = scmp.lt.u32.totalorder %s1255_s29, %s1486_s3 }
 0x715   :  { %p1261_p7 = pnand %p1259_p6, %p1256_p5 }
 0x717   :  { %1264 = shalt.err (!%p1261_p7)
}
 0x718   :  { %966 = dma.vmem_to_hbm [thread:$0]  %s964_s25, 16, %s1486_s3, [#allocation3]  }
 0x719   :  { %1265 = dma.done.wait [#allocation3], 16  }
 0x71a   :  { %1266 = vsyncadd [#allocation3], 4294967280 }
 0x71b   :  { %970 = vsyncpa [#allocation3], 1 }

</bundles_post_ra>
